<compile_context>
chip_gen: v7x
topology: tpu7x:2x2x1
jax: 0.10.0
libtpu: 0.0.40
codegen_flags: <defaults>
</compile_context>

<pallas_src>
import functools

import jax
import jax.numpy as jnp
from jax.experimental import pallas as pl
from jax.experimental.pallas import tpu as pltpu

INPUT_DIM = 290
HIDDEN = (256, 128, 64)
PATH_DIM = 32
LABEL_DIM = 1

_DIMS = (INPUT_DIM,) + HIDDEN + (PATH_DIM,)  # (290, 256, 128, 64, 32)


def _silu(z):
    # SiLU(z) = z * sigmoid(z) = 0.5 * z * (1 + tanh(z/2)); single EUP transcendental,
    # saturates cleanly for large |z| (no exp overflow / inf handling needed).
    return 0.5 * z * (1.0 + jnp.tanh(0.5 * z))


def _dense_silu(h_bf16, w_ref, b_ref):
    z = jnp.dot(h_bf16, w_ref[...], preferred_element_type=jnp.float32) + b_ref[...]
    return _silu(z)


def _pathnet_kernel(x_ref, w1_ref, b1_ref, w2_ref, b2_ref, w3_ref, b3_ref,
                    w4_ref, b4_ref, feat_ref):
    # Encoder: 4 x (Linear + SiLU + AlphaDropout[eval == identity]).
    # x arrives as f32; cast to bf16 on the VPU only for the MXU operands.
    h = _dense_silu(x_ref[...].astype(jnp.bfloat16), w1_ref, b1_ref)  # (TB, 256) f32
    h = _dense_silu(h.astype(jnp.bfloat16), w2_ref, b2_ref)           # (TB, 128) f32
    h = _dense_silu(h.astype(jnp.bfloat16), w3_ref, b3_ref)           # (TB,  64) f32
    feat = _dense_silu(h.astype(jnp.bfloat16), w4_ref, b4_ref)        # (TB,  32) f32
    feat_ref[...] = feat


def _round_up(n, m):
    return ((n + m - 1) // m) * m


def _default_row_tile():
    """Per-generation batch tile: 2048 rows on v5e/v6e (128 MiB VMEM); 1024 otherwise
    (v7x has 64 MiB VMEM per TensorCore and 2 cores -> smaller tiles keep both fed)."""
    try:
        kind = jax.devices()[0].device_kind.lower()
    except Exception:
        return 1024
    if "v5e" in kind or "v5 lite" in kind or "v6" in kind:
        return 2048
    return 1024


@functools.partial(jax.jit, static_argnames=("tb",))
def _pathnet_past_forward_impl(pa_st, params, *, tb):
    w1, b1, w2, b2, w3, b3, w4, b4, wc, bc = params
    B = pa_st.shape[0]

    # Row tile: multiple of 8 (f32 sublane pack).  No wrapper-side pad of x: if the
    # tile does not divide B, Pallas handles the ragged final block (out-of-bounds
    # reads only feed rows whose writes are dropped).
    tb = max(8, min(_round_up(tb, 8), _round_up(B, 8)))
    num_tiles = pl.cdiv(B, tb)

    # Only the tiny weights (~120K params) are pre-cast to bf16; biases stay f32.
    w1b, w2b, w3b, w4b = (w.astype(jnp.bfloat16) for w in (w1, w2, w3, w4))

    def _resident(shape):
        # Same block index every grid step -> fetched once, stays resident in VMEM.
        return pl.BlockSpec(shape, lambda i: (0,) * len(shape))

    feat = pl.pallas_call(
        _pathnet_kernel,
        grid=(num_tiles,),
        in_specs=[
            pl.BlockSpec((tb, INPUT_DIM), lambda i: (i, 0)),          # x tile (streamed, f32)
            _resident((INPUT_DIM, HIDDEN[0])), _resident((1, HIDDEN[0])),
            _resident((HIDDEN[0], HIDDEN[1])), _resident((1, HIDDEN[1])),
            _resident((HIDDEN[1], HIDDEN[2])), _resident((1, HIDDEN[2])),
            _resident((HIDDEN[2], PATH_DIM)), _resident((1, PATH_DIM)),
        ],
        out_specs=pl.BlockSpec((tb, PATH_DIM), lambda i: (i, 0)),
        out_shape=jax.ShapeDtypeStruct((B, PATH_DIM), jnp.float32),
        compiler_params=pltpu.CompilerParams(
            dimension_semantics=("parallel",),  # v7x: batch tiles shard across both TCs
            vmem_limit_bytes=(64 if tb >= 2048 else 48) * 1024 * 1024,
        ),
    )(pa_st, w1b, b1, w2b, b2, w3b, b3, w4b, b4)

    # Classifier Linear(32 -> 1): tiny; computed in XLA from feat so the kernel never
    # emits a lane-sparse (tb, 1) output block.
    out = jnp.sum(feat * wc, axis=-1, keepdims=True) + bc[0, 0]
    return feat, out


def pathnet_past_forward(pa_st, params, *, tb=None):
    """pa_st: (B, 290) f32. Returns (features (B, 32) f32, out (B, 1) f32)."""
    if tb is None:
        tb = _default_row_tile()
    return _pathnet_past_forward_impl(pa_st, params, tb=int(tb))


def pathnet_past_apply(params, **kwargs):
    """Mirrors the PyTorch forward: only pa3 (path_PaSt_features) feeds the encoder."""
    return pathnet_past_forward(kwargs["pa3"], params)


def init_params(key):
    """Xavier-uniform-like init; weights stored transposed as [in_features, out_features].
    # TODO(synk): not bit-matching PyTorch nn.Linear's default kaiming/1/sqrt(fan_in) init.
    """
    pairs = list(zip(_DIMS[:-1], _DIMS[1:]))  # 4 encoder layers
    keys = jax.random.split(key, 2 * (len(pairs) + 1))
    params = []
    for n, (fi, fo) in enumerate(pairs):
        lim = (6.0 / (fi + fo)) ** 0.5
        params.append(jax.random.uniform(keys[2 * n], (fi, fo), jnp.float32, -lim, lim))
        params.append(jax.random.uniform(keys[2 * n + 1], (1, fo), jnp.float32, -lim, lim))
    lim = (6.0 / (PATH_DIM + LABEL_DIM)) ** 0.5
    wc = jax.random.uniform(keys[-2], (1, PATH_DIM), jnp.float32, -lim, lim)  # Linear(32,1).weight row
    bc = jax.random.uniform(keys[-1], (1, 1), jnp.float32, -lim, lim)
    # output_range / output_shift exist in the module but are unused when act is None.
    return tuple(params) + (wc, bc)


def _reference_forward_matched(pa_st, params):
    """Plain-JAX reference using the same bf16 operand rounding as the kernel."""
    w1, b1, w2, b2, w3, b3, w4, b4, wc, bc = params

    def layer(h, w, b):
        z = jnp.dot(h.astype(jnp.bfloat16), w.astype(jnp.bfloat16),
                    preferred_element_type=jnp.float32) + b
        return z * jax.nn.sigmoid(z)

    h = layer(pa_st, w1, b1)
    h = layer(h, w2, b2)
    h = layer(h, w3, b3)
    feat = layer(h, w4, b4)
    out = jnp.sum(feat * wc, axis=-1, keepdims=True) + bc[0, 0]
    return feat, out


def _reference_forward_f32(pa_st, params):
    """Pure-f32 reference matching PyTorch eval-mode semantics (parity check)."""
    w1, b1, w2, b2, w3, b3, w4, b4, wc, bc = params

    def layer(h, w, b):
        z = jnp.dot(h, w, precision=jax.lax.Precision.HIGHEST,
                    preferred_element_type=jnp.float32) + b
        return z * jax.nn.sigmoid(z)

    h = layer(pa_st, w1, b1)
    h = layer(h, w2, b2)
    h = layer(h, w3, b3)
    feat = layer(h, w4, b4)
    out = jnp.sum(feat * wc, axis=-1, keepdims=True) + bc[0, 0]
    return feat, out


if __name__ == "__main__":
    key = jax.random.PRNGKey(0)
    kx, kp = jax.random.split(key)

    batch = 64
    kxs = jax.random.split(kx, 4)
    # kwargs pa1..pa4; this variant (PaSt) only consumes pa3.
    pas = {f"pa{i + 1}": jax.random.normal(kxs[i], (batch, INPUT_DIM), jnp.float32)
           for i in range(4)}

    params = init_params(kp)

    # Default tile (whole batch fits in one grid step at this size).
    features, out = pathnet_past_apply(params, **pas)
    jax.block_until_ready((features, out))
    assert features.shape == (batch, PATH_DIM) and out.shape == (batch, LABEL_DIM)

    # Small tile -> multi-step streamed grid (exercises the pipelined path: 4 tiles).
    feat_tiled, out_tiled = pathnet_past_forward(pas["pa3"], params, tb=16)
    jax.block_until_ready((feat_tiled, out_tiled))

    feat_m, out_m = _reference_forward_matched(pas["pa3"], params)
    feat_f, out_f = _reference_forward_f32(pas["pa3"], params)

    # Tight check against a reference with matched bf16 rounding.
    assert jnp.allclose(features, feat_m, atol=5e-3, rtol=5e-3)
    assert jnp.allclose(out, out_m, atol=5e-3, rtol=5e-3)
    assert jnp.allclose(feat_tiled, feat_m, atol=5e-3, rtol=5e-3)
    assert jnp.allclose(out_tiled, out_m, atol=5e-3, rtol=5e-3)

    # Looser check against the pure-f32 (PyTorch-parity) reference.
    assert jnp.allclose(features, feat_f, atol=3e-2, rtol=3e-2)
    assert jnp.allclose(out, out_f, atol=3e-2, rtol=3e-2)

    print("KERNEL_OK")
</pallas_src>

<mosaic_0001>
module attributes {stable_mosaic.version = 11 : i64} {
  func.func @_pathnet_kernel(%arg0: i32, %arg1: memref<64x290xf32, #tpu.memory_space<vmem>>, %arg2: memref<290x256xbf16, #tpu.memory_space<vmem>>, %arg3: memref<1x256xf32, #tpu.memory_space<vmem>>, %arg4: memref<256x128xbf16, #tpu.memory_space<vmem>>, %arg5: memref<1x128xf32, #tpu.memory_space<vmem>>, %arg6: memref<128x64xbf16, #tpu.memory_space<vmem>>, %arg7: memref<1x64xf32, #tpu.memory_space<vmem>>, %arg8: memref<64x32xbf16, #tpu.memory_space<vmem>>, %arg9: memref<1x32xf32, #tpu.memory_space<vmem>>, %arg10: memref<64x32xf32, #tpu.memory_space<vmem>>) attributes {dimension_semantics = [#tpu.dimension_semantics<parallel>], iteration_bounds = array<i64: 1>, scalar_prefetch = 0 : i64, scratch_operands = 0 : i64, tpu.core_type = #tpu.core_type<tc>, window_params = [{transform_indices = @transform_0, window_bounds = array<i64: 64, 290>}, {pipeline_mode = #tpu.pipeline_mode<synchronous>, transform_indices = @transform_1, window_bounds = array<i64: 290, 256>}, {pipeline_mode = #tpu.pipeline_mode<synchronous>, transform_indices = @transform_2, window_bounds = array<i64: 1, 256>}, {pipeline_mode = #tpu.pipeline_mode<synchronous>, transform_indices = @transform_3, window_bounds = array<i64: 256, 128>}, {pipeline_mode = #tpu.pipeline_mode<synchronous>, transform_indices = @transform_4, window_bounds = array<i64: 1, 128>}, {pipeline_mode = #tpu.pipeline_mode<synchronous>, transform_indices = @transform_5, window_bounds = array<i64: 128, 64>}, {pipeline_mode = #tpu.pipeline_mode<synchronous>, transform_indices = @transform_6, window_bounds = array<i64: 1, 64>}, {pipeline_mode = #tpu.pipeline_mode<synchronous>, transform_indices = @transform_7, window_bounds = array<i64: 64, 32>}, {pipeline_mode = #tpu.pipeline_mode<synchronous>, transform_indices = @transform_8, window_bounds = array<i64: 1, 32>}, {transform_indices = @transform_9, window_bounds = array<i64: 64, 32>}]} {
    %c0 = arith.constant 0 : index
    %c0_0 = arith.constant 0 : index
    %0 = vector.load %arg1[%c0, %c0_0] : memref<64x290xf32, #tpu.memory_space<vmem>>, vector<64x290xf32>
    %1 = arith.truncf %0 : vector<64x290xf32> to vector<64x290xbf16>
    %c0_1 = arith.constant 0 : index
    %c0_2 = arith.constant 0 : index
    %2 = vector.load %arg2[%c0_1, %c0_2] : memref<290x256xbf16, #tpu.memory_space<vmem>>, vector<290x256xbf16>
    %cst = arith.constant dense<0.000000e+00> : vector<64x256xf32>
    %3 = tpu.matmul %1, %2, %cst {dimension_numbers = #tpu.dot_dimension_numbers<[1], [0], [0], [1], [0, 0, 1, 1], [], []>} : vector<64x290xbf16>, vector<290x256xbf16>, vector<64x256xf32> -> vector<64x256xf32>
    %c0_3 = arith.constant 0 : index
    %c0_4 = arith.constant 0 : index
    %4 = vector.load %arg3[%c0_3, %c0_4] : memref<1x256xf32, #tpu.memory_space<vmem>>, vector<1x256xf32>
    %5 = vector.broadcast %4 : vector<1x256xf32> to vector<64x256xf32>
    %6 = arith.addf %3, %5 : vector<64x256xf32>
    %cst_5 = arith.constant 5.000000e-01 : f32
    %7 = vector.broadcast %cst_5 : f32 to vector<64x256xf32>
    %8 = arith.mulf %7, %6 : vector<64x256xf32>
    %cst_6 = arith.constant 5.000000e-01 : f32
    %9 = vector.broadcast %cst_6 : f32 to vector<64x256xf32>
    %10 = arith.mulf %9, %6 : vector<64x256xf32>
    %11 = math.tanh %10 : vector<64x256xf32>
    %cst_7 = arith.constant 1.000000e+00 : f32
    %12 = vector.broadcast %cst_7 : f32 to vector<64x256xf32>
    %13 = arith.addf %12, %11 : vector<64x256xf32>
    %14 = arith.mulf %8, %13 : vector<64x256xf32>
    %15 = arith.truncf %14 : vector<64x256xf32> to vector<64x256xbf16>
    %c0_8 = arith.constant 0 : index
    %c0_9 = arith.constant 0 : index
    %16 = vector.load %arg4[%c0_8, %c0_9] : memref<256x128xbf16, #tpu.memory_space<vmem>>, vector<256x128xbf16>
    %cst_10 = arith.constant dense<0.000000e+00> : vector<64x128xf32>
    %17 = tpu.matmul %15, %16, %cst_10 {dimension_numbers = #tpu.dot_dimension_numbers<[1], [0], [0], [1], [0, 0, 1, 1], [], []>} : vector<64x256xbf16>, vector<256x128xbf16>, vector<64x128xf32> -> vector<64x128xf32>
    %c0_11 = arith.constant 0 : index
    %c0_12 = arith.constant 0 : index
    %18 = vector.load %arg5[%c0_11, %c0_12] : memref<1x128xf32, #tpu.memory_space<vmem>>, vector<1x128xf32>
    %19 = vector.broadcast %18 : vector<1x128xf32> to vector<64x128xf32>
    %20 = arith.addf %17, %19 : vector<64x128xf32>
    %cst_13 = arith.constant 5.000000e-01 : f32
    %21 = vector.broadcast %cst_13 : f32 to vector<64x128xf32>
    %22 = arith.mulf %21, %20 : vector<64x128xf32>
    %cst_14 = arith.constant 5.000000e-01 : f32
    %23 = vector.broadcast %cst_14 : f32 to vector<64x128xf32>
    %24 = arith.mulf %23, %20 : vector<64x128xf32>
    %25 = math.tanh %24 : vector<64x128xf32>
    %cst_15 = arith.constant 1.000000e+00 : f32
    %26 = vector.broadcast %cst_15 : f32 to vector<64x128xf32>
    %27 = arith.addf %26, %25 : vector<64x128xf32>
    %28 = arith.mulf %22, %27 : vector<64x128xf32>
    %29 = arith.truncf %28 : vector<64x128xf32> to vector<64x128xbf16>
    %c0_16 = arith.constant 0 : index
    %c0_17 = arith.constant 0 : index
    %30 = vector.load %arg6[%c0_16, %c0_17] : memref<128x64xbf16, #tpu.memory_space<vmem>>, vector<128x64xbf16>
    %cst_18 = arith.constant dense<0.000000e+00> : vector<64x64xf32>
    %31 = tpu.matmul %29, %30, %cst_18 {dimension_numbers = #tpu.dot_dimension_numbers<[1], [0], [0], [1], [0, 0, 1, 1], [], []>} : vector<64x128xbf16>, vector<128x64xbf16>, vector<64x64xf32> -> vector<64x64xf32>
    %c0_19 = arith.constant 0 : index
    %c0_20 = arith.constant 0 : index
    %32 = vector.load %arg7[%c0_19, %c0_20] : memref<1x64xf32, #tpu.memory_space<vmem>>, vector<1x64xf32>
    %33 = vector.broadcast %32 : vector<1x64xf32> to vector<64x64xf32>
    %34 = arith.addf %31, %33 : vector<64x64xf32>
    %cst_21 = arith.constant 5.000000e-01 : f32
    %35 = vector.broadcast %cst_21 : f32 to vector<64x64xf32>
    %36 = arith.mulf %35, %34 : vector<64x64xf32>
    %cst_22 = arith.constant 5.000000e-01 : f32
    %37 = vector.broadcast %cst_22 : f32 to vector<64x64xf32>
    %38 = arith.mulf %37, %34 : vector<64x64xf32>
    %39 = math.tanh %38 : vector<64x64xf32>
    %cst_23 = arith.constant 1.000000e+00 : f32
    %40 = vector.broadcast %cst_23 : f32 to vector<64x64xf32>
    %41 = arith.addf %40, %39 : vector<64x64xf32>
    %42 = arith.mulf %36, %41 : vector<64x64xf32>
    %43 = arith.truncf %42 : vector<64x64xf32> to vector<64x64xbf16>
    %c0_24 = arith.constant 0 : index
    %c0_25 = arith.constant 0 : index
    %44 = vector.load %arg8[%c0_24, %c0_25] : memref<64x32xbf16, #tpu.memory_space<vmem>>, vector<64x32xbf16>
    %cst_26 = arith.constant dense<0.000000e+00> : vector<64x32xf32>
    %45 = tpu.matmul %43, %44, %cst_26 {dimension_numbers = #tpu.dot_dimension_numbers<[1], [0], [0], [1], [0, 0, 1, 1], [], []>} : vector<64x64xbf16>, vector<64x32xbf16>, vector<64x32xf32> -> vector<64x32xf32>
    %c0_27 = arith.constant 0 : index
    %c0_28 = arith.constant 0 : index
    %46 = vector.load %arg9[%c0_27, %c0_28] : memref<1x32xf32, #tpu.memory_space<vmem>>, vector<1x32xf32>
    %47 = vector.broadcast %46 : vector<1x32xf32> to vector<64x32xf32>
    %48 = arith.addf %45, %47 : vector<64x32xf32>
    %cst_29 = arith.constant 5.000000e-01 : f32
    %49 = vector.broadcast %cst_29 : f32 to vector<64x32xf32>
    %50 = arith.mulf %49, %48 : vector<64x32xf32>
    %cst_30 = arith.constant 5.000000e-01 : f32
    %51 = vector.broadcast %cst_30 : f32 to vector<64x32xf32>
    %52 = arith.mulf %51, %48 : vector<64x32xf32>
    %53 = math.tanh %52 : vector<64x32xf32>
    %cst_31 = arith.constant 1.000000e+00 : f32
    %54 = vector.broadcast %cst_31 : f32 to vector<64x32xf32>
    %55 = arith.addf %54, %53 : vector<64x32xf32>
    %56 = arith.mulf %50, %55 : vector<64x32xf32>
    %c0_32 = arith.constant 0 : index
    %c0_33 = arith.constant 0 : index
    %57 = vector.load %arg10[%c0_32, %c0_33] : memref<64x32xf32, #tpu.memory_space<vmem>>, vector<64x32xf32>
    tpu.vector_store %arg10[%c0_32, %c0_33], %56 {strides = array<i32>} : memref<64x32xf32, #tpu.memory_space<vmem>>, vector<64x32xf32>,
    return
  }
  func.func @transform_0(%arg0: i32) -> (i32, i32) {
    %c0_i32 = arith.constant 0 : i32
    %c0_i32_0 = arith.constant 0 : i32
    return %arg0, %c0_i32 : i32, i32
  }
  func.func @transform_1(%arg0: i32) -> (i32, i32) {
    %c0_i32 = arith.constant 0 : i32
    %c0_i32_0 = arith.constant 0 : i32
    %c0_i32_1 = arith.constant 0 : i32
    return %c0_i32, %c0_i32_0 : i32, i32
  }
  func.func @transform_2(%arg0: i32) -> (i32, i32) {
    %c0_i32 = arith.constant 0 : i32
    %c0_i32_0 = arith.constant 0 : i32
    %c0_i32_1 = arith.constant 0 : i32
    return %c0_i32, %c0_i32_0 : i32, i32
  }
  func.func @transform_3(%arg0: i32) -> (i32, i32) {
    %c0_i32 = arith.constant 0 : i32
    %c0_i32_0 = arith.constant 0 : i32
    %c0_i32_1 = arith.constant 0 : i32
    return %c0_i32, %c0_i32_0 : i32, i32
  }
  func.func @transform_4(%arg0: i32) -> (i32, i32) {
    %c0_i32 = arith.constant 0 : i32
    %c0_i32_0 = arith.constant 0 : i32
    %c0_i32_1 = arith.constant 0 : i32
    return %c0_i32, %c0_i32_0 : i32, i32
  }
  func.func @transform_5(%arg0: i32) -> (i32, i32) {
    %c0_i32 = arith.constant 0 : i32
    %c0_i32_0 = arith.constant 0 : i32
    %c0_i32_1 = arith.constant 0 : i32
    return %c0_i32, %c0_i32_0 : i32, i32
  }
  func.func @transform_6(%arg0: i32) -> (i32, i32) {
    %c0_i32 = arith.constant 0 : i32
    %c0_i32_0 = arith.constant 0 : i32
    %c0_i32_1 = arith.constant 0 : i32
    return %c0_i32, %c0_i32_0 : i32, i32
  }
  func.func @transform_7(%arg0: i32) -> (i32, i32) {
    %c0_i32 = arith.constant 0 : i32
    %c0_i32_0 = arith.constant 0 : i32
    %c0_i32_1 = arith.constant 0 : i32
    return %c0_i32, %c0_i32_0 : i32, i32
  }
  func.func @transform_8(%arg0: i32) -> (i32, i32) {
    %c0_i32 = arith.constant 0 : i32
    %c0_i32_0 = arith.constant 0 : i32
    %c0_i32_1 = arith.constant 0 : i32
    return %c0_i32, %c0_i32_0 : i32, i32
  }
  func.func @transform_9(%arg0: i32) -> (i32, i32) {
    %c0_i32 = arith.constant 0 : i32
    %c0_i32_0 = arith.constant 0 : i32
    return %arg0, %c0_i32 : i32, i32
  }
}

</mosaic_0001>

<bundles_post_ra>
// kernel: _pathnet_past_forward_impl.1
= control target key start
LH: loop header
LB: loop body
LE: loop exit
PB: predicated region body
PF: predicated region fallthrough
CT: control target
= control target key end

     0   :  { %v1494_v1 = vmov 0   ;;  %vm316_vm0 = vcmask 1040384   ;;  %vm303_vm1 = vcmask 277504   ;;  %vm988_vm2 = vcmask 523264   ;;  %s1924_s1 = inlined_call_operand.vmem [shape: bf16[290,256], index: 1, kind: input, shape index: {}]   ;;  %s1925_s0 = inlined_call_operand.vmem [shape: f32[64,290], index: 0, kind: input, shape index: {}]   ;;  %s1926_s3 = inlined_call_operand.vmem [shape: bf16[256,128], index: 3, kind: input, shape index: {}]   ;;  %s1927_s2 = inlined_call_operand.vmem [shape: f32[1,256], index: 2, kind: input, shape index: {}]   ;;  %s1928_s5 = inlined_call_operand.vmem [shape: bf16[128,64], index: 5, kind: input, shape index: {}]   ;;  %s1929_s4 = inlined_call_operand.vmem [shape: f32[1,128], index: 4, kind: input, shape index: {}]   ;;  %s1930_s7 = inlined_call_operand.vmem [shape: bf16[64,32], index: 7, kind: input, shape index: {}]   ;;  %s1931_s6 = inlined_call_operand.vmem [shape: f32[1,64], index: 6, kind: input, shape index: {}]   ;;  %s1932_s8 = inlined_call_operand.vmem [shape: f32[1,32], index: 8, kind: input, shape index: {}]   ;;  %s1933_s9 = inlined_call_operand.vmem [shape: f32[64,32], index: 9, kind: output, shape index: {}]  }
   0x1   :  { %v1330_v0 = vld [vmem:[%s1924_s1 + $0x4] ss:$8 sps:$4 sm:$0xff]   ;;  %428 = vmatprep.mubr.bf16.mxu1 %v1494_v1  ;;  %v1332_v2 = vld [vmem:[%s1924_s1] ss:$8 sps:$4 sm:$0xff]   ;;  %v1333_v3 = vld [vmem:[%s1924_s1 + $0x14] ss:$8 sps:$4 sm:$0xff]  }
   0x2   :  { %323 = vmatprep.subr.bf16.mxu0 %v1330_v0  ;;  %v1335_v4 = vld [vmem:[%s1924_s1 + $0x10] ss:$8 sps:$4 sm:$0xff]   ;;  %v1336_v5 = vld [vmem:[%s1924_s1 + $0x24] ss:$8 sps:$4 sm:$0xff]   ;;  %v1338_v6 = vld [vmem:[%s1924_s1 + $0x20] ss:$8 sps:$4 sm:$0xff]  }
   0x3   :  { %324 = vmatpush1.bf16.msra.mxu0 %v1332_v2  ;;  %v1339_v7 = vld [vmem:[%s1924_s1 + $0x34] ss:$8 sps:$4 sm:$0xff]   ;;  %v1341_v8 = vld [vmem:[%s1924_s1 + $0x30] ss:$8 sps:$4 sm:$0xff]   ;;  %v1342_v9 = vld [vmem:[%s1924_s1 + $0x44] ss:$8 sps:$4 sm:$0xff]  }
   0x4   :  { %325 = vmatprep.subr.bf16.mxu0 %v1333_v3  ;;  %v1344_v10 = vld [vmem:[%s1924_s1 + $0x40] ss:$8 sps:$4 sm:$0xff]   ;;  %v1345_v11 = vld [vmem:[%s1924_s1 + $0x54] ss:$8 sps:$4 sm:$0xff]   ;;  %v1369_v12 = vld [vmem:[%s1924_s1 + $0x104] ss:$8 sps:$4 sm:$0xff]  }
   0x5   :  { %v1347_v13 = vld [vmem:[%s1924_s1 + $0x50] ss:$8 sps:$4 sm:$0xff]   ;;  %v1348_v14 = vld [vmem:[%s1924_s1 + $0x64] ss:$8 sps:$4 sm:$0xff]   ;;  %v1373_v15 = vld [vmem:[%s1924_s1 + $0x100] ss:$8 sps:$4 sm:$0xff]   ;;  %396 = vmatprep.subr.bf16.mxu1 %v1369_v12 }
   0x6   :  { %v1375_v16 = vld [vmem:[%s1924_s1 + $0x114] ss:$8 sps:$4 sm:$0xff]   ;;  %397 = vmatpush1.bf16.msra.mxu1 %v1373_v15  ;;  %v1379_v17 = vld [vmem:[%s1924_s1 + $0x110] ss:$8 sps:$4 sm:$0xff]   ;;  %v105_v18 = vld [vmem:[%s1924_s1 + $0x120] sm:$0x11] }
   0x7   :  { %326 = vmatpush1.bf16.msra.mxu0 %v1335_v4  ;;  %398 = vmatprep.subr.bf16.mxu1 %v1375_v16  ;;  %v1350_v19 = vld [vmem:[%s1924_s1 + $0x60] ss:$8 sps:$4 sm:$0xff]   ;;  %v1148_v20 = vcombine.high %v105_v18, %v105_v18  ;;  %v1147_v21 = vcombine.low %v105_v18, %v105_v18  ;;  %v1351_v22 = vld [vmem:[%s1924_s1 + $0x74] ss:$8 sps:$4 sm:$0xff]   ;;  %v1353_v29 = vld [vmem:[%s1924_s1 + $0x70] ss:$8 sps:$4 sm:$0xff]  }
   0x8   :  { %327 = vmatprep.subr.bf16.mxu0 %v1336_v5  ;;  %v34_v23 = vld [vmem:[%s1925_s0 + $0x8] sm:$0xff]  ;;  %v37_v24 = vld [vmem:[%s1925_s0 + $0x20] sm:$0xff]  ;;  %v35_v26 = vld [vmem:[%s1925_s0 + $0x10] sm:$0xff]  ;;  %vm1098_vm3 = vcmask 261120  }
   0x9   :  { %v58_v25 = vpack.c.bf16 %v37_v24, %v34_v23  ;;  %v38_v27 = vld [vmem:[%s1925_s0 + $0x28] sm:$0xff]  ;;  %v318_v28 = vsel %vm316_vm0, %v1147_v21, 0  ;;  %v1357_v33 = vld [vmem:[%s1924_s1 + $0x94] ss:$8 sps:$4 sm:$0xff]   ;;  %v41_v34 = vld [vmem:[%s1925_s0 + $0x40] sm:$0xff] }
   0xa   :  { %399 = vmatpush1.bf16.msra.mxu1 %v1379_v17  ;;  %v1354_v30 = vld [vmem:[%s1924_s1 + $0x84] ss:$8 sps:$4 sm:$0xff]   ;;  %v59_v31 = vpack.c.bf16 %v38_v27, %v35_v26  ;;  %v1356_v32 = vld [vmem:[%s1924_s1 + $0x80] ss:$8 sps:$4 sm:$0xff]   ;;  %v44_v35 = vld [vmem:[%s1925_s0 + $0x58] sm:$0xff] }
   0xb   :  { %328 = vmatpush1.bf16.msra.mxu0 %v1338_v6  ;;  %1149 = vmatprep.subr.msk.bf16.mxu1 %vm316_vm0, %v1148_v20  ;;  %v1359_v36 = vld [vmem:[%s1924_s1 + $0x90] ss:$8 sps:$4 sm:$0xff]   ;;  %v1386_v37 = vld [vmem:[%s1926_s3 + $0x40] sm:$0xff]   ;;  %v62_v40 = vpack.c.bf16 %v44_v35, %v41_v34  ;;  %v1363_v42 = vld [vmem:[%s1924_s1 + $0xb4] ss:$8 sps:$4 sm:$0xff]  }
   0xc   :  { %329 = vmatprep.subr.bf16.mxu0 %v1339_v7  ;;  %355 = vmatprep.mubr.bf16.mxu0 %v58_v25  ;;  %v1360_v38 = vld [vmem:[%s1924_s1 + $0xa4] ss:$8 sps:$4 sm:$0xff]   ;;  %v1362_v41 = vld [vmem:[%s1924_s1 + $0xa0] ss:$8 sps:$4 sm:$0xff]   ;;  %v47_v43 = vld [vmem:[%s1925_s0 + $0x70] sm:$0xff] }
   0xd   :  { %v1387_v39 = vld [vmem:[%s1926_s3] sm:$0xff]   ;;  %v50_v44 = vld [vmem:[%s1925_s0 + $0x88] sm:$0xff]  ;;  %v1365_v45 = vld [vmem:[%s1924_s1 + $0xb0] ss:$8 sps:$4 sm:$0xff]  }
   0xe   :  { %401 = vmatpush1.bf16.msra.mxu1 %v318_v28  ;;  %v1366_v46 = vld [vmem:[%s1924_s1 + $0xc4] ss:$8 sps:$4 sm:$0xff]   ;;  %v65_v47 = vpack.c.bf16 %v50_v44, %v47_v43  ;;  %v1368_v48 = vld [vmem:[%s1924_s1 + $0xc0] ss:$8 sps:$4 sm:$0xff]   ;;  %v1371_v49 = vld [vmem:[%s1924_s1 + $0xd4] ss:$8 sps:$4 sm:$0xff]  }
   0xf   :  { %330 = vmatpush1.bf16.msra.mxu0 %v1341_v8  ;;  %1189 = vmatprep.subr.bf16.mxu1 %v1386_v37  ;;  %v53_v50 = vld [vmem:[%s1925_s0 + $0xa0] sm:$0xff]  ;;  %v56_v51 = vld [vmem:[%s1925_s0 + $0xb8] sm:$0xff]  ;;  %v43_v61 = vld [vmem:[%s1925_s0 + $0x50] sm:$0xff] }
  0x10   :  { %331 = vmatprep.subr.bf16.mxu0 %v1342_v9  ;;  %v1374_v52 = vld [vmem:[%s1924_s1 + $0xd0] ss:$8 sps:$4 sm:$0xff]   ;;  %v1377_v53 = vld [vmem:[%s1924_s1 + $0xe4] ss:$8 sps:$4 sm:$0xff]   ;;  %v68_v54 = vpack.c.bf16 %v56_v51, %v53_v50  ;;  %v1380_v55 = vld [vmem:[%s1924_s1 + $0xe0] ss:$8 sps:$4 sm:$0xff]  }
  0x11   :  { %1150 = vmatmul.mubr.msk.bf16.vlgmr.msra.gmra.mrb[0].mxu1 %vm303_vm1, %v59_v31  ;;  %v1382_v56 = vld [vmem:[%s1924_s1 + $0xf4] ss:$8 sps:$4 sm:$0xff]   ;;  %v1385_v57 = vld [vmem:[%s1924_s1 + $0xf0] ss:$8 sps:$4 sm:$0xff]   ;;  %v33_v58 = vld [vmem:[%s1925_s0] sm:$0xff] }
  0x12   :  { %438 = vmatprep.mubr.bf16.mxu1 %v1494_v1  ;;  %1190 = vmatpush3.bf16.msra.mxu1 %v1387_v39  ;;  %v36_v59 = vld [vmem:[%s1925_s0 + $0x18] sm:$0xff]  ;;  %v39_v0 = vld [vmem:[%s1925_s0 + $0x30] sm:$0xff]  ;;  %v46_v2 = vld [vmem:[%s1925_s0 + $0x68] sm:$0xff] }
  0x13   :  { %332 = vmatpush1.bf16.msra.mxu0 %v1344_v10  ;;  %v40_v60 = vld [vmem:[%s1925_s0 + $0x38] sm:$0xff]  ;;  %v57_v62 = vpack.c.bf16 %v36_v59, %v33_v58  ;;  %v49_v3 = vld [vmem:[%s1925_s0 + $0x80] sm:$0xff]  ;;  %v55_v9 = vld [vmem:[%s1925_s0 + $0xb0] sm:$0xff] }
  0x14   :  { %333 = vmatprep.subr.bf16.mxu0 %v1345_v11  ;;  %v61_v63 = vpack.c.bf16 %v43_v61, %v40_v60  ;;  %v64_v5 = vpack.c.bf16 %v49_v3, %v46_v2  ;;  %v45_v6 = vld [vmem:[%s1925_s0 + $0x60] sm:$0xff]  ;;  %v48_v7 = vld [vmem:[%s1925_s0 + $0x78] sm:$0xff]  ;;  %v51_v12 = vld [vmem:[%s1925_s0 + $0x90] sm:$0xff] }
  0x15   :  { %v52_v8 = vld [vmem:[%s1925_s0 + $0x98] sm:$0xff]  ;;  %v63_v10 = vpack.c.bf16 %v48_v7, %v45_v6  ;;  %v1388_v15 = vld [vmem:[%s1926_s3 + $0x48] sm:$0xff]   ;;  %v1390_v17 = vld [vmem:[%s1926_s3 + $0x50] sm:$0xff]  }
  0x16   :  { %v67_v11 = vpack.c.bf16 %v55_v9, %v52_v8  ;;  %1191 = vmatprep.subr.bf16.mxu1 %v1388_v15  ;;  %v1389_v16 = vld [vmem:[%s1926_s3 + $0x8] sm:$0xff]   ;;  %v1391_v18 = vld [vmem:[%s1926_s3 + $0x10] sm:$0xff]   ;;  %v1393_v20 = vld [vmem:[%s1926_s3 + $0x18] sm:$0xff]  }
  0x17   :  { %334 = vmatpush1.bf16.msra.mxu0 %v1347_v13  ;;  %v54_v13 = vld [vmem:[%s1925_s0 + $0xa8] sm:$0xff]  ;;  %1192 = vmatpush3.bf16.msra.mxu1 %v1389_v16  ;;  %v1394_v21 = vld [vmem:[%s1926_s3 + $0x60] sm:$0xff]   ;;  %v1398_v25 = vld [vmem:[%s1926_s3 + $0x70] sm:$0xff]  }
  0x18   :  { %335 = vmatprep.subr.bf16.mxu0 %v1348_v14  ;;  %v66_v14 = vpack.c.bf16 %v54_v13, %v51_v12  ;;  %1193 = vmatprep.subr.bf16.mxu1 %v1390_v17  ;;  %v1396_v23 = vld [vmem:[%s1926_s3 + $0x68] sm:$0xff]   ;;  %v1399_v26 = vld [vmem:[%s1926_s3 + $0x30] sm:$0xff]   ;;  %v1400_v27 = vld [vmem:[%s1926_s3 + $0x78] sm:$0xff]  }
  0x19   :  { %1151 = vmatmul.mubr.msk.bf16.gmra.mrb[4].mxu1 %vm303_vm1, %v62_v40  ;;  %v1397_v24 = vld [vmem:[%s1926_s3 + $0x28] sm:$0xff]   ;;  %v1401_v28 = vld [vmem:[%s1926_s3 + $0x38] sm:$0xff]   ;;  %v108_v40 = vlaneseq }
  0x1a   :  { %448 = vmatprep.mubr.bf16.mxu1 %v1494_v1 }
  0x1b   :  { %336 = vmatpush1.bf16.msra.mxu0 %v1350_v19  ;;  %1194 = vmatpush3.bf16.msra.mxu1 %v1391_v18  ;;  %v1392_v19 = vld [vmem:[%s1926_s3 + $0x58] sm:$0xff]  }
  0x1c   :  { %337 = vmatprep.subr.bf16.mxu0 %v1351_v22  ;;  %1195 = vmatprep.subr.bf16.mxu1 %v1392_v19  ;;  %v1395_v22 = vld [vmem:[%s1926_s3 + $0x20] sm:$0xff]  }
  0x1f   :  { %338 = vmatpush1.bf16.msra.mxu0 %v1353_v29  ;;  %1196 = vmatpush3.bf16.msra.mxu1 %v1393_v20 }
  0x20   :  { %339 = vmatprep.subr.bf16.mxu0 %v1354_v30  ;;  %1197 = vmatprep.subr.bf16.mxu1 %v1394_v21 }
  0x21   :  { %1152 = vmatmul.mubr.msk.bf16.gmra.mrb[8].mxu1 %vm303_vm1, %v65_v47 }
  0x22   :  { %458 = vmatprep.mubr.bf16.mxu1 %v1494_v1  ;;  %v42_v1 = vld [vmem:[%s1925_s0 + $0x48] sm:$0xff] }
  0x23   :  { %340 = vmatpush1.bf16.msra.mxu0 %v1356_v32  ;;  %v60_v4 = vpack.c.bf16 %v42_v1, %v39_v0  ;;  %1198 = vmatpush3.bf16.msra.mxu1 %v1395_v22 }
  0x24   :  { %341 = vmatprep.subr.bf16.mxu0 %v1357_v33  ;;  %1199 = vmatprep.subr.bf16.mxu1 %v1396_v23 }
  0x27   :  { %342 = vmatpush1.bf16.msra.mxu0 %v1359_v36  ;;  %1200 = vmatpush3.bf16.msra.mxu1 %v1397_v24 }
  0x28   :  { %343 = vmatprep.subr.bf16.mxu0 %v1360_v38  ;;  %1201 = vmatprep.subr.bf16.mxu1 %v1398_v25 }
  0x29   :  { %1153 = vmatmul.mubr.msk.bf16.gmra.mrb[12].mxu1 %vm303_vm1, %v68_v54 }
  0x2b   :  { %344 = vmatpush1.bf16.msra.mxu0 %v1362_v41  ;;  %1202 = vmatpush3.bf16.msra.mxu1 %v1399_v26 }
  0x2c   :  { %345 = vmatprep.subr.bf16.mxu0 %v1363_v42  ;;  %1203 = vmatprep.subr.bf16.mxu1 %v1400_v27  ;;  %v109_v42 = vshrl.u32 %v108_v40, 7 }
  0x2f   :  { %346 = vmatpush1.bf16.msra.mxu0 %v1365_v45  ;;  %1204 = vmatpush3.bf16.msra.mxu1 %v1401_v28 }
  0x30   :  { %347 = vmatprep.subr.bf16.mxu0 %v1366_v46  ;;  %v110_v46 = vsub.s32 0, %v109_v42 }
  0x33   :  { %348 = vmatpush1.bf16.msra.mxu0 %v1368_v48  ;;  %v106_v48 = vld [vmem:[%s1927_s2] sm:$0x3] }
  0x34   :  { %349 = vmatprep.subr.bf16.mxu0 %v1371_v49  ;;  %v114_v49 = vsub.s32 1, %v109_v42  ;;  %v1803_v50 = vrot.slane %v106_v48, %v110_v46 }
  0x36   :  { %v1805_v51 = vrot.slane %v106_v48, %v114_v49 }
  0x37   :  { %350 = vmatpush1.bf16.msra.mxu0 %v1374_v52 }
  0x38   :  { %351 = vmatprep.subr.bf16.mxu0 %v1377_v53 }
  0x3b   :  { %352 = vmatpush1.bf16.msra.mxu0 %v1380_v55 }
  0x3c   :  { %353 = vmatprep.subr.bf16.mxu0 %v1382_v56 }
  0x3f   :  { %354 = vmatpush1.bf16.msra.mxu0 %v1385_v57 }
  0x42   :  { %356 = vmatmul.mubr.bf16.vlgmr.msra.gmra.mrb[0].mxu0 %v57_v62 }
  0x43   :  { %365 = vmatprep.mubr.bf16.mxu0 %v61_v63 }
  0x4a   :  { %366 = vmatmul.mubr.bf16.gmra.mrb[4].mxu0 %v60_v4 }
  0x4b   :  { %375 = vmatprep.mubr.bf16.mxu0 %v64_v5 }
  0x52   :  { %376 = vmatmul.mubr.bf16.gmra.mrb[8].mxu0 %v63_v10 }
  0x53   :  { %385 = vmatprep.mubr.bf16.mxu0 %v67_v11 }
  0x5a   :  { %386 = vmatmul.mubr.bf16.gmra.mrb[12].mxu0 %v66_v14 }
  0xe4   :  { %v430_v29 = vpop.f32.mrb[0].mxu1 }
  0xe5   :  { %v432_v30 = vpop.f32.mrb[1].mxu1 }
  0xe6   :  { %v434_v31 = vpop.f32.mrb[2].mxu1 }
  0xe7   :  { %v436_v32 = vpop.f32.mrb[3].mxu1 }
  0xec   :  { %v440_v33 = vpop.f32.mrb[4].mxu1 }
  0xed   :  { %v442_v34 = vpop.f32.mrb[5].mxu1 }
  0xee   :  { %v444_v35 = vpop.f32.mrb[6].mxu1 }
  0xef   :  { %v446_v36 = vpop.f32.mrb[7].mxu1 }
  0xf4   :  { %v1784_v37 = vpop.f32.mrb[8].mxu1 }
  0xf5   :  { %v1786_v38 = vpop.f32.mrb[9].mxu1 }
  0xf6   :  { %v1788_v39 = vpop.f32.mrb[10].mxu1 }
  0xf7   :  { %v1790_v41 = vpop.f32.mrb[11].mxu1 }
  0xfc   :  { %v1792_v43 = vpop.f32.mrb[12].mxu1 }
  0xfd   :  { %v1794_v44 = vpop.f32.mrb[13].mxu1 }
  0xfe   :  { %v1796_v45 = vpop.f32.mrb[14].mxu1 }
  0xff   :  { %v1798_v47 = vpop.f32.mrb[15].mxu1 }
 0x115   :  { %v357_v52 = vpop.f32.mrb[0].mxu0 }
 0x116   :  { %v358_v53 = vadd.f32 %v357_v52, %v1803_v50  ;;  %v359_v54 = vpop.f32.mrb[1].mxu0 }
 0x117   :  { %v360_v55 = vadd.f32 %v359_v54, %v1805_v51  ;;  %v361_v56 = vpop.f32.mrb[2].mxu0 }
 0x118   :  { %v431_v57 = vadd.f32 %v430_v29, %v358_v53  ;;  %v362_v58 = vadd.f32 %v361_v56, %v1803_v50  ;;  %v363_v59 = vpop.f32.mrb[3].mxu0 }
 0x119   :  { %v433_v60 = vadd.f32 %v432_v30, %v360_v55  ;;  %v364_v61 = vadd.f32 %v363_v59, %v1805_v51 }
 0x11a   :  { %v469_v62 = vmul.f32 0.5, %v431_v57  ;;  %v435_v63 = vadd.f32 %v434_v31, %v362_v58 }
 0x11b   :  { %v470_v0 = vmul.f32 0.5, %v433_v60  ;;  %v437_v1 = vadd.f32 %v436_v32, %v364_v61 }
 0x11c   :  { %1414 = vtanh.f32 %v469_v62  ;;  %v471_v2 = vmul.f32 0.5, %v435_v63 }
 0x11d   :  { %1416 = vtanh.f32 %v470_v0  ;;  %v472_v3 = vmul.f32 0.5, %v437_v1  ;;  %v367_v4 = vpop.f32.mrb[4].mxu0 }
 0x11e   :  { %1418 = vtanh.f32 %v471_v2  ;;  %v368_v5 = vadd.f32 %v367_v4, %v1803_v50  ;;  %v369_v6 = vpop.f32.mrb[5].mxu0 }
 0x11f   :  { %1420 = vtanh.f32 %v472_v3  ;;  %v370_v7 = vadd.f32 %v369_v6, %v1805_v51  ;;  %v371_v8 = vpop.f32.mrb[6].mxu0 }
 0x120   :  { %v441_v9 = vadd.f32 %v440_v33, %v368_v5  ;;  %v372_v10 = vadd.f32 %v371_v8, %v1803_v50  ;;  %v373_v11 = vpop.f32.mrb[7].mxu0 }
 0x121   :  { %v443_v12 = vadd.f32 %v442_v34, %v370_v7  ;;  %v374_v13 = vadd.f32 %v373_v11, %v1805_v51 }
 0x122   :  { %v1815_v14 = vmul.f32 0.5, %v441_v9  ;;  %v445_v15 = vadd.f32 %v444_v35, %v372_v10 }
 0x123   :  { %v1817_v16 = vmul.f32 0.5, %v443_v12  ;;  %v447_v17 = vadd.f32 %v446_v36, %v374_v13 }
 0x124   :  { %1422 = vtanh.f32 %v1815_v14  ;;  %v475_v18 = vmul.f32 0.5, %v445_v15 }
 0x125   :  { %1424 = vtanh.f32 %v1817_v16  ;;  %v1821_v19 = vmul.f32 0.5, %v447_v17  ;;  %v377_v20 = vpop.f32.mrb[8].mxu0 }
 0x126   :  { %v1415_v21 = vpop.eup %1414  ;;  %1426 = vtanh.f32 %v475_v18  ;;  %v378_v22 = vadd.f32 %v377_v20, %v1803_v50  ;;  %v379_v23 = vpop.f32.mrb[9].mxu0 }
 0x127   :  { %v1417_v24 = vpop.eup %1416  ;;  %v501_v25 = vadd.f32 1.0, %v1415_v21  ;;  %1428 = vtanh.f32 %v1821_v19  ;;  %v380_v26 = vadd.f32 %v379_v23, %v1805_v51  ;;  %v381_v27 = vpop.f32.mrb[10].mxu0 }
 0x128   :  { %v1419_v28 = vpop.eup %1418  ;;  %v502_v29 = vadd.f32 1.0, %v1417_v24  ;;  %v451_v30 = vadd.f32 %v1784_v37, %v378_v22  ;;  %v382_v31 = vadd.f32 %v381_v27, %v1803_v50  ;;  %v383_v32 = vpop.f32.mrb[11].mxu0 }
 0x129   :  { %v1421_v33 = vpop.eup %1420  ;;  %v503_v34 = vadd.f32 1.0, %v1419_v28  ;;  %v453_v35 = vadd.f32 %v1786_v38, %v380_v26  ;;  %v384_v36 = vadd.f32 %v383_v32, %v1805_v51  ;;  %v517_v48 = vmul.f32 %v501_v25, %v469_v62 }
 0x12a   :  { %v504_v40 = vadd.f32 1.0, %v1421_v33  ;;  %v477_v42 = vmul.f32 0.5, %v451_v30  ;;  %v455_v46 = vadd.f32 %v1788_v39, %v382_v31  ;;  %v518_v54 = vmul.f32 %v502_v29, %v470_v0 }
 0x12b   :  { %v519_v49 = vmul.f32 %v503_v34, %v471_v2  ;;  %v478_v52 = vmul.f32 0.5, %v453_v35  ;;  %v457_v53 = vadd.f32 %v1790_v41, %v384_v36 }
 0x12c   :  { %v520_v37 = vmul.f32 %v504_v40, %v472_v3  ;;  %1430 = vtanh.f32 %v477_v42  ;;  %v479_v55 = vmul.f32 0.5, %v455_v46 }
 0x12d   :  { %v533_v56 = vpack.c.bf16 %v519_v49, %v517_v48  ;;  %1432 = vtanh.f32 %v478_v52  ;;  %v480_v57 = vmul.f32 0.5, %v457_v53  ;;  %v387_v58 = vpop.f32.mrb[12].mxu0 }
 0x12e   :  { %v1423_v38 = vpop.eup %1422  ;;  %1434 = vtanh.f32 %v479_v55  ;;  %v388_v59 = vadd.f32 %v387_v58, %v1803_v50  ;;  %v389_v60 = vpop.f32.mrb[13].mxu0  ;;  %v534_v61 = vpack.c.bf16 %v520_v37, %v518_v54  ;;  %v1403_v37 = vld [vmem:[%s1928_s5 + $0x8] sm:$0xff]  }
 0x12f   :  { %v1425_v39 = vpop.eup %1424  ;;  %v505_v62 = vadd.f32 1.0, %v1423_v38  ;;  %1436 = vtanh.f32 %v480_v57  ;;  %v390_v63 = vadd.f32 %v389_v60, %v1805_v51  ;;  %v391_v41 = vpop.f32.mrb[14].mxu0  ;;  %v1407_v58 = vld [vmem:[%s1928_s5 + $0x28] sm:$0xff]   ;;  %v1408_v38 = vld [vmem:[%s1928_s5 + $0x30] sm:$0xff]  }
 0x130   :  { %v1427_v0 = vpop.eup %1426  ;;  %v506_v1 = vadd.f32 1.0, %v1425_v39  ;;  %v461_v2 = vadd.f32 %v1792_v43, %v388_v59  ;;  %v392_v3 = vadd.f32 %v391_v41, %v1803_v50  ;;  %v393_v4 = vpop.f32.mrb[15].mxu0  ;;  %708 = vmatprep.mubr.bf16.mxu1 %v534_v61  ;;  %v1409_v59 = vld [vmem:[%s1928_s5 + $0x38] sm:$0xff]   ;;  %v1154_v61 = vld [vmem:[%s1929_s4] ss:$0 sm:$0xff] }
 0x131   :  { %v1429_v5 = vpop.eup %1428  ;;  %v507_v6 = vadd.f32 1.0, %v1427_v0  ;;  %v463_v7 = vadd.f32 %v1794_v44, %v390_v63  ;;  %v394_v8 = vadd.f32 %v393_v4, %v1805_v51  ;;  %709 = vmatmul.mubr.bf16.vlgmr.msra.gmra.mrb[16].mxu1 %v533_v56  ;;  %v521_v12 = vmul.f32 %v505_v62, %v1815_v14  ;;  %v1405_v56 = vld [vmem:[%s1928_s5 + $0x18] sm:$0xff]  }
 0x132   :  { %v508_v9 = vadd.f32 1.0, %v1429_v5  ;;  %v481_v10 = vmul.f32 0.5, %v461_v2  ;;  %v465_v11 = vadd.f32 %v1796_v45, %v392_v3  ;;  %v522_v50 = vmul.f32 %v506_v1, %v1817_v16 }
 0x133   :  { %v523_v13 = vmul.f32 %v507_v6, %v475_v18  ;;  %v482_v15 = vmul.f32 0.5, %v463_v7  ;;  %v467_v43 = vadd.f32 %v1798_v47, %v394_v8 }
 0x134   :  { %v524_v17 = vmul.f32 %v508_v9, %v1821_v19  ;;  %1438 = vtanh.f32 %v481_v10  ;;  %v483_v20 = vmul.f32 0.5, %v465_v11 }
 0x135   :  { %1440 = vtanh.f32 %v482_v15  ;;  %v484_v44 = vmul.f32 0.5, %v467_v43  ;;  %v535_v51 = vpack.c.bf16 %v523_v13, %v521_v12 }
 0x136   :  { %v1431_v21 = vpop.eup %1430  ;;  %1442 = vtanh.f32 %v483_v20  ;;  %v536_v22 = vpack.c.bf16 %v524_v17, %v522_v50 }
 0x137   :  { %v1433_v23 = vpop.eup %1432  ;;  %v509_v45 = vadd.f32 1.0, %v1431_v21  ;;  %1444 = vtanh.f32 %v484_v44 }
 0x138   :  { %v1435_v14 = vpop.eup %1434  ;;  %v510_v18 = vadd.f32 1.0, %v1433_v23  ;;  %716 = vmatprep.mubr.bf16.mxu1 %v536_v22 }
 0x139   :  { %v1437_v24 = vpop.eup %1436  ;;  %v511_v47 = vadd.f32 1.0, %v1435_v14  ;;  %717 = vmatmul.mubr.bf16.gmra.mrb[20].mxu1 %v535_v51  ;;  %v525_v25 = vmul.f32 %v509_v45, %v477_v42 }
 0x13a   :  { %v512_v16 = vadd.f32 1.0, %v1437_v24  ;;  %v526_v26 = vmul.f32 %v510_v18, %v478_v52  ;;  %v1402_v52 = vld [vmem:[%s1928_s5] sm:$0xff]  }
 0x13b   :  { %v527_v19 = vmul.f32 %v511_v47, %v479_v55  ;;  %1249 = vmatprep.subr.bf16.mxu1 %v1402_v52  ;;  %v1404_v55 = vld [vmem:[%s1928_s5 + $0x10] sm:$0xff]  }
 0x13c   :  { %v528_v27 = vmul.f32 %v512_v16, %v480_v57  ;;  %1250 = vmatpush3.bf16.msra.mxu1 %v1402_v52  ;;  %v1406_v57 = vld [vmem:[%s1928_s5 + $0x20] sm:$0xff]  }
 0x13d   :  { %v537_v28 = vpack.c.bf16 %v527_v19, %v525_v25  ;;  %1251 = vmatprep.subr.bf16.mxu1 %v1403_v37 }
 0x13e   :  { %v1439_v29 = vpop.eup %1438  ;;  %v538_v30 = vpack.c.bf16 %v528_v27, %v526_v26 }
 0x13f   :  { %v1441_v31 = vpop.eup %1440  ;;  %v513_v32 = vadd.f32 1.0, %v1439_v29 }
 0x140   :  { %v1443_v33 = vpop.eup %1442  ;;  %v514_v34 = vadd.f32 1.0, %v1441_v31  ;;  %724 = vmatprep.mubr.bf16.mxu1 %v538_v30  ;;  %1252 = vmatpush3.bf16.msra.mxu1 %v1403_v37 }
 0x141   :  { %v1445_v35 = vpop.eup %1444  ;;  %v515_v36 = vadd.f32 1.0, %v1443_v33  ;;  %725 = vmatmul.mubr.bf16.gmra.mrb[24].mxu1 %v537_v28  ;;  %v529_v46 = vmul.f32 %v513_v32, %v481_v10  ;;  %1253 = vmatprep.subr.bf16.mxu1 %v1404_v55 }
 0x142   :  { %v516_v40 = vadd.f32 1.0, %v1445_v35  ;;  %v530_v49 = vmul.f32 %v514_v34, %v482_v15 }
 0x143   :  { %v531_v48 = vmul.f32 %v515_v36, %v483_v20 }
 0x144   :  { %v532_v53 = vmul.f32 %v516_v40, %v484_v44  ;;  %1254 = vmatpush3.bf16.msra.mxu1 %v1404_v55 }
 0x145   :  { %v539_v42 = vpack.c.bf16 %v531_v48, %v529_v46  ;;  %1255 = vmatprep.subr.bf16.mxu1 %v1405_v56 }
 0x146   :  { %v540_v54 = vpack.c.bf16 %v532_v53, %v530_v49 }
 0x148   :  { %732 = vmatprep.mubr.bf16.mxu1 %v540_v54  ;;  %1256 = vmatpush3.bf16.msra.mxu1 %v1405_v56 }
 0x149   :  { %733 = vmatmul.mubr.bf16.gmra.mrb[28].mxu1 %v539_v42  ;;  %1257 = vmatprep.subr.bf16.mxu1 %v1406_v57 }
 0x14c   :  { %1258 = vmatpush3.bf16.msra.mxu1 %v1406_v57 }
 0x14d   :  { %1259 = vmatprep.subr.bf16.mxu1 %v1407_v58 }
 0x150   :  { %1260 = vmatpush3.bf16.msra.mxu1 %v1407_v58 }
 0x151   :  { %1261 = vmatprep.subr.bf16.mxu1 %v1408_v38 }
 0x154   :  { %1262 = vmatpush3.bf16.msra.mxu1 %v1408_v38 }
 0x155   :  { %1263 = vmatprep.subr.bf16.mxu1 %v1409_v59 }
 0x158   :  { %1264 = vmatpush3.bf16.msra.mxu1 %v1409_v59 }
 0x204   :  { %v1205_v60 = vpop.f32.mrb[16].mxu1 }
 0x205   :  { %v1206_v39 = vpop.f32.mrb[17].mxu1 }
 0x206   :  { %v1207_v62 = vadd.f32 %v1206_v39, %v1205_v60  ;;  %v1208_v63 = vpop.f32.mrb[18].mxu1 }
 0x207   :  { %v1209_v41 = vpop.f32.mrb[19].mxu1 }
 0x208   :  { %v711_v0 = vadd.f32 %v1207_v62, %v1154_v61  ;;  %v1210_v1 = vadd.f32 %v1209_v41, %v1208_v63  ;;  %v1410_v41 = vld [vmem:[%s1930_s7] sm:$0xff]  }
 0x209   :  { %1273 = vmatprep.subr.bf16.mxu0 %v1410_v41  ;;  %1289 = vmatprep.subr.bf16.mxu1 %v1410_v41 }
 0x20a   :  { %v741_v2 = vmul.f32 0.5, %v711_v0  ;;  %v714_v3 = vadd.f32 %v1210_v1, %v1154_v61  ;;  %1274 = vmatpush3.bf16.msra.mxu0 %v1410_v41  ;;  %v1411_v0 = vld [vmem:[%s1930_s7 + $0x8] sm:$0xff]   ;;  %v1412_v1 = vld [vmem:[%s1930_s7 + $0x10] sm:$0xff]  }
 0x20b   :  { %1275 = vmatprep.subr.bf16.mxu0 %v1411_v0 }
 0x20c   :  { %1446 = vtanh.f32 %v741_v2  ;;  %v742_v4 = vmul.f32 0.5, %v714_v3  ;;  %v1211_v5 = vpop.f32.mrb[20].mxu1  ;;  %v1171_v3 = vld [vmem:[%s1931_s6] ss:$0 sm:$0xff] }
 0x20d   :  { %v1212_v6 = vpop.f32.mrb[21].mxu1 }
 0x20e   :  { %1448 = vtanh.f32 %v742_v4  ;;  %v1213_v7 = vadd.f32 %v1212_v6, %v1211_v5  ;;  %v1214_v8 = vpop.f32.mrb[22].mxu1  ;;  %1276 = vmatpush3.bf16.msra.mxu0 %v1411_v0 }
 0x20f   :  { %v1215_v9 = vpop.f32.mrb[23].mxu1  ;;  %1277 = vmatprep.subr.bf16.mxu0 %v1412_v1 }
 0x210   :  { %v719_v10 = vadd.f32 %v1213_v7, %v1154_v61  ;;  %v1216_v11 = vadd.f32 %v1215_v9, %v1214_v8 }
 0x212   :  { %v743_v12 = vmul.f32 0.5, %v719_v10  ;;  %v722_v13 = vadd.f32 %v1216_v11, %v1154_v61  ;;  %1278 = vmatpush3.bf16.msra.mxu0 %v1412_v1 }
 0x214   :  { %1450 = vtanh.f32 %v743_v12  ;;  %v744_v15 = vmul.f32 0.5, %v722_v13  ;;  %v1217_v43 = vpop.f32.mrb[24].mxu1 }
 0x215   :  { %v1218_v50 = vpop.f32.mrb[25].mxu1 }
 0x216   :  { %v1447_v17 = vpop.eup %1446  ;;  %1452 = vtanh.f32 %v744_v15  ;;  %v1219_v20 = vadd.f32 %v1218_v50, %v1217_v43  ;;  %v1220_v44 = vpop.f32.mrb[26].mxu1 }
 0x217   :  { %v757_v51 = vadd.f32 1.0, %v1447_v17  ;;  %v1221_v21 = vpop.f32.mrb[27].mxu1 }
 0x218   :  { %v1449_v22 = vpop.eup %1448  ;;  %v727_v23 = vadd.f32 %v1219_v20, %v1154_v61  ;;  %v1222_v45 = vadd.f32 %v1221_v21, %v1220_v44 }
 0x219   :  { %v758_v14 = vadd.f32 1.0, %v1449_v22  ;;  %v765_v47 = vmul.f32 %v757_v51, %v741_v2  ;;  %v1413_v2 = vld [vmem:[%s1930_s7 + $0x18] sm:$0xff]  }
 0x21a   :  { %v745_v18 = vmul.f32 0.5, %v727_v23  ;;  %v730_v24 = vadd.f32 %v1222_v45, %v1154_v61  ;;  %1279 = vmatprep.subr.bf16.mxu0 %v1413_v2 }
 0x21b   :  { %v766_v16 = vmul.f32 %v758_v14, %v742_v4  ;;  %1280 = vmatpush3.bf16.msra.mxu0 %v1413_v2 }
 0x21c   :  { %1454 = vtanh.f32 %v745_v18  ;;  %v746_v25 = vmul.f32 0.5, %v730_v24  ;;  %v1223_v19 = vpop.f32.mrb[28].mxu1 }
 0x21d   :  { %v1224_v26 = vpop.f32.mrb[29].mxu1  ;;  %v773_v27 = vpack.c.bf16 %v766_v16, %v765_v47 }
 0x21e   :  { %v1451_v28 = vpop.eup %1450  ;;  %1456 = vtanh.f32 %v746_v25  ;;  %v1225_v29 = vadd.f32 %v1224_v26, %v1223_v19  ;;  %v1226_v30 = vpop.f32.mrb[30].mxu1 }
 0x21f   :  { %v759_v31 = vadd.f32 1.0, %v1451_v28  ;;  %v1227_v32 = vpop.f32.mrb[31].mxu1  ;;  %1265 = vmatprep.mubr.bf16.mxu1 %v773_v27 }
 0x220   :  { %v1453_v33 = vpop.eup %1452  ;;  %v735_v34 = vadd.f32 %v1225_v29, %v1154_v61  ;;  %v1228_v35 = vadd.f32 %v1227_v32, %v1226_v30 }
 0x221   :  { %v760_v36 = vadd.f32 1.0, %v1453_v33  ;;  %v767_v48 = vmul.f32 %v759_v31, %v743_v12 }
 0x222   :  { %v747_v40 = vmul.f32 0.5, %v735_v34  ;;  %v738_v46 = vadd.f32 %v1228_v35, %v1154_v61 }
 0x223   :  { %v768_v49 = vmul.f32 %v760_v36, %v744_v15 }
 0x224   :  { %1458 = vtanh.f32 %v747_v40  ;;  %v748_v53 = vmul.f32 0.5, %v738_v46 }
 0x225   :  { %v774_v42 = vpack.c.bf16 %v768_v49, %v767_v48 }
 0x226   :  { %v1455_v54 = vpop.eup %1454  ;;  %1460 = vtanh.f32 %v748_v53 }
 0x227   :  { %v761_v52 = vadd.f32 1.0, %v1455_v54  ;;  %1266 = vmatmul.mubr.bf16.vlgmr.msra.gmra.mrb[32].mxu1 %v774_v42 }
 0x228   :  { %v1457_v37 = vpop.eup %1456  ;;  %1293 = vmatpush3.bf16.msra.mxu1 %v1410_v41 }
 0x229   :  { %v762_v55 = vadd.f32 1.0, %v1457_v37  ;;  %v769_v56 = vmul.f32 %v761_v52, %v745_v18  ;;  %1290 = vmatprep.subr.bf16.mxu1 %v1411_v0 }
 0x22b   :  { %v770_v57 = vmul.f32 %v762_v55, %v746_v25 }
 0x22c   :  { %1294 = vmatpush3.bf16.msra.mxu1 %v1411_v0 }
 0x22d   :  { %v775_v58 = vpack.c.bf16 %v770_v57, %v769_v56  ;;  %1291 = vmatprep.subr.bf16.mxu1 %v1412_v1 }
 0x22e   :  { %v1459_v38 = vpop.eup %1458 }
 0x22f   :  { %v763_v59 = vadd.f32 1.0, %v1459_v38  ;;  %1269 = vmatprep.mubr.bf16.mxu1 %v775_v58  ;;  %v1180_v38 = vld [vmem:[%s1932_s8] ss:$0 sm:$0xff] }
 0x230   :  { %v1461_v60 = vpop.eup %1460  ;;  %1295 = vmatpush3.bf16.msra.mxu1 %v1412_v1 }
 0x231   :  { %v764_v39 = vadd.f32 1.0, %v1461_v60  ;;  %v771_v61 = vmul.f32 %v763_v59, %v747_v40  ;;  %1292 = vmatprep.subr.bf16.mxu1 %v1413_v2 }
 0x233   :  { %v772_v62 = vmul.f32 %v764_v39, %v748_v53 }
 0x234   :  { %1296 = vmatpush3.bf16.msra.mxu1 %v1413_v2 }
 0x235   :  { %v776_v63 = vpack.c.bf16 %v772_v62, %v771_v61 }
 0x237   :  { %1270 = vmatmul.mubr.bf16.gmra.mrb[36].mxu1 %v776_v63 }
 0x2fa   :  { %v1267_v4 = vpop.f32.mrb[32].mxu1 }
 0x2fb   :  { %v891_v5 = vadd.f32 %v1267_v4, %v1171_v3  ;;  %v882_v6 = vpop.f32.mrb[33].mxu1 }
 0x2fc   :  { %v883_v7 = vadd.f32 %v1171_v3, %v882_v6  ;;  %v1268_v8 = vpop.f32.mrb[34].mxu1 }
 0x2fd   :  { %v915_v9 = vmul.f32 0.5, %v891_v5  ;;  %v894_v10 = vadd.f32 %v1268_v8, %v1171_v3  ;;  %v885_v11 = vpop.f32.mrb[35].mxu1 }
 0x2fe   :  { %v913_v12 = vmul.f32 0.5, %v883_v7  ;;  %v886_v13 = vadd.f32 %v1171_v3, %v885_v11 }
 0x2ff   :  { %1462 = vtanh.f32 %v915_v9  ;;  %v916_v15 = vmul.f32 0.5, %v894_v10 }
 0x300   :  { %1464 = vtanh.f32 %v913_v12  ;;  %v914_v43 = vmul.f32 0.5, %v886_v13 }
 0x301   :  { %1466 = vtanh.f32 %v916_v15 }
 0x302   :  { %1468 = vtanh.f32 %v914_v43 }
 0x309   :  { %v1463_v50 = vpop.eup %1462 }
 0x30a   :  { %v1465_v17 = vpop.eup %1464  ;;  %v931_v20 = vadd.f32 1.0, %v1463_v50  ;;  %v1271_v44 = vpop.f32.mrb[36].mxu1 }
 0x30b   :  { %v1467_v51 = vpop.eup %1466  ;;  %v929_v21 = vadd.f32 1.0, %v1465_v17  ;;  %v907_v22 = vadd.f32 %v1271_v44, %v1171_v3  ;;  %v898_v23 = vpop.f32.mrb[37].mxu1 }
 0x30c   :  { %v1469_v45 = vpop.eup %1468  ;;  %v932_v14 = vadd.f32 1.0, %v1467_v51  ;;  %v899_v18 = vadd.f32 %v1171_v3, %v898_v23  ;;  %v1272_v24 = vpop.f32.mrb[38].mxu1  ;;  %v939_v26 = vmul.f32 %v931_v20, %v915_v9 }
 0x30d   :  { %v930_v47 = vadd.f32 1.0, %v1469_v45  ;;  %v919_v16 = vmul.f32 0.5, %v907_v22  ;;  %v910_v25 = vadd.f32 %v1272_v24, %v1171_v3  ;;  %v901_v19 = vpop.f32.mrb[39].mxu1  ;;  %v937_v30 = vmul.f32 %v929_v21, %v913_v12 }
 0x30e   :  { %v940_v27 = vmul.f32 %v932_v14, %v916_v15  ;;  %v917_v28 = vmul.f32 0.5, %v899_v18  ;;  %v902_v29 = vadd.f32 %v1171_v3, %v901_v19 }
 0x30f   :  { %v938_v31 = vmul.f32 %v930_v47, %v914_v43  ;;  %1470 = vtanh.f32 %v919_v16  ;;  %v920_v32 = vmul.f32 0.5, %v910_v25 }
 0x310   :  { %v946_v33 = vpack.c.bf16 %v940_v27, %v939_v26  ;;  %1472 = vtanh.f32 %v917_v28  ;;  %v918_v34 = vmul.f32 0.5, %v902_v29 }
 0x311   :  { %v945_v35 = vpack.c.bf16 %v938_v31, %v937_v30  ;;  %1474 = vtanh.f32 %v920_v32 }
 0x312   :  { %1476 = vtanh.f32 %v918_v34 }
 0x313   :  { %1281 = vmatprep.mubr.msk.bf16.mxu0 %vm988_vm2, %v945_v35 }
 0x314   :  { %1282 = vmatmul.mubr.msk.bf16.vlgmr.msra.gmra.mrb[16].mxu0 %vm988_vm2, %v946_v33 }
 0x319   :  { %v1471_v36 = vpop.eup %1470 }
 0x31a   :  { %v1473_v40 = vpop.eup %1472  ;;  %v935_v46 = vadd.f32 1.0, %v1471_v36 }
 0x31b   :  { %v1475_v48 = vpop.eup %1474  ;;  %v933_v49 = vadd.f32 1.0, %v1473_v40 }
 0x31c   :  { %v1477_v53 = vpop.eup %1476  ;;  %v936_v42 = vadd.f32 1.0, %v1475_v48  ;;  %v943_v52 = vmul.f32 %v935_v46, %v919_v16 }
 0x31d   :  { %v934_v54 = vadd.f32 1.0, %v1477_v53  ;;  %v941_v55 = vmul.f32 %v933_v49, %v917_v28 }
 0x31e   :  { %v944_v37 = vmul.f32 %v936_v42, %v920_v32 }
 0x31f   :  { %v942_v56 = vmul.f32 %v934_v54, %v918_v34 }
 0x320   :  { %v948_v57 = vpack.c.bf16 %v944_v37, %v943_v52 }
 0x321   :  { %v947_v58 = vpack.c.bf16 %v942_v56, %v941_v55 }
 0x323   :  { %1285 = vmatprep.mubr.msk.bf16.mxu1 %vm988_vm2, %v947_v58 }
 0x324   :  { %1286 = vmatmul.mubr.msk.bf16.vlgmr.msra.gmra.mrb[40].mxu1 %vm988_vm2, %v948_v57 }
 0x3e7   :  { %v1283_v59 = vpop.f32.mrb[16].mxu0 }
 0x3e8   :  { %v1044_v60 = vadd.f32 %v1283_v59, %v1180_v38  ;;  %v1035_v39 = vpop.f32.mrb[17].mxu0 }
 0x3e9   :  { %v1036_v61 = vadd.f32 %v1180_v38, %v1035_v39  ;;  %v1284_v62 = vpop.f32.mrb[18].mxu0 }
 0x3ea   :  { %v1068_v63 = vmul.f32 0.5, %v1044_v60  ;;  %v1047_v41 = vadd.f32 %v1284_v62, %v1180_v38  ;;  %v1038_v0 = vpop.f32.mrb[19].mxu0 }
 0x3eb   :  { %v1066_v1 = vmul.f32 0.5, %v1036_v61  ;;  %v1039_v2 = vadd.f32 %v1180_v38, %v1038_v0 }
 0x3ec   :  { %1478 = vtanh.f32 %v1068_v63  ;;  %v1069_v3 = vmul.f32 0.5, %v1047_v41 }
 0x3ed   :  { %1480 = vtanh.f32 %v1066_v1  ;;  %v1067_v4 = vmul.f32 0.5, %v1039_v2 }
 0x3ee   :  { %1482 = vtanh.f32 %v1069_v3 }
 0x3ef   :  { %1484 = vtanh.f32 %v1067_v4 }
 0x3f6   :  { %v1479_v5 = vpop.eup %1478 }
 0x3f7   :  { %v1481_v6 = vpop.eup %1480  ;;  %v1084_v7 = vadd.f32 1.0, %v1479_v5  ;;  %v1287_v8 = vpop.f32.mrb[40].mxu1 }
 0x3f8   :  { %v1483_v9 = vpop.eup %1482  ;;  %v1082_v10 = vadd.f32 1.0, %v1481_v6  ;;  %v1060_v11 = vadd.f32 %v1287_v8, %v1180_v38  ;;  %v1051_v12 = vpop.f32.mrb[41].mxu1 }
 0x3f9   :  { %v1485_v13 = vpop.eup %1484  ;;  %v1092_v15 = vmul.f32 %v1084_v7, %v1068_v63  ;;  %v1085_v43 = vadd.f32 1.0, %v1483_v9  ;;  %v1052_v50 = vadd.f32 %v1180_v38, %v1051_v12  ;;  %v1288_v17 = vpop.f32.mrb[42].mxu1 }
 0x3fa   :  { %v1090_v20 = vmul.f32 %v1082_v10, %v1066_v1  ;;  %v1083_v44 = vadd.f32 1.0, %v1485_v13  ;;  %v1072_v51 = vmul.f32 0.5, %v1060_v11  ;;  %v1063_v21 = vadd.f32 %v1288_v17, %v1180_v38  ;;  %v1054_v22 = vpop.f32.mrb[43].mxu1 }
 0x3fb   :  { %1101 = vst.msk [vmem:[%s1933_s9 + $0x10] sm:$0xff] %vm1098_vm3, %v1092_v15  ;;  %v1093_v23 = vmul.f32 %v1085_v43, %v1069_v3  ;;  %v1070_v45 = vmul.f32 0.5, %v1052_v50  ;;  %v1055_v14 = vadd.f32 %v1180_v38, %v1054_v22 }
 0x3fc   :  { %1099 = vst.msk [vmem:[%s1933_s9] sm:$0xff] %vm1098_vm3, %v1090_v20  ;;  %v1091_v18 = vmul.f32 %v1083_v44, %v1067_v4  ;;  %1486 = vtanh.f32 %v1072_v51  ;;  %v1073_v24 = vmul.f32 0.5, %v1063_v21 }
 0x3fd   :  { %1102 = vst.msk [vmem:[%s1933_s9 + $0x18] sm:$0xff] %vm1098_vm3, %v1093_v23  ;;  %1488 = vtanh.f32 %v1070_v45  ;;  %v1071_v47 = vmul.f32 0.5, %v1055_v14 }
 0x3fe   :  { %1100 = vst.msk [vmem:[%s1933_s9 + $0x8] sm:$0xff] %vm1098_vm3, %v1091_v18  ;;  %1490 = vtanh.f32 %v1073_v24 }
 0x3ff   :  { %1492 = vtanh.f32 %v1071_v47 }
 0x406   :  { %v1487_v16 = vpop.eup %1486 }
 0x407   :  { %v1489_v25 = vpop.eup %1488  ;;  %v1088_v19 = vadd.f32 1.0, %v1487_v16 }
 0x408   :  { %v1491_v26 = vpop.eup %1490  ;;  %v1086_v27 = vadd.f32 1.0, %v1489_v25 }
 0x409   :  { %v1493_v28 = vpop.eup %1492  ;;  %v1096_v29 = vmul.f32 %v1088_v19, %v1072_v51  ;;  %v1089_v30 = vadd.f32 1.0, %v1491_v26 }
 0x40a   :  { %v1094_v31 = vmul.f32 %v1086_v27, %v1070_v45  ;;  %v1087_v32 = vadd.f32 1.0, %v1493_v28 }
 0x40b   :  { %1105 = vst.msk [vmem:[%s1933_s9 + $0x30] sm:$0xff] %vm1098_vm3, %v1096_v29  ;;  %v1097_v33 = vmul.f32 %v1089_v30, %v1073_v24 }
 0x40c   :  { %1103 = vst.msk [vmem:[%s1933_s9 + $0x20] sm:$0xff] %vm1098_vm3, %v1094_v31  ;;  %v1095_v34 = vmul.f32 %v1087_v32, %v1071_v47 }
 0x40d   :  { %1106 = vst.msk [vmem:[%s1933_s9 + $0x38] sm:$0xff] %vm1098_vm3, %v1097_v33 }
 0x40e   :  { %1104 = vst.msk [vmem:[%s1933_s9 + $0x28] sm:$0xff] %vm1098_vm3, %v1095_v34 }

</bundles_post_ra>
